<compile_context>
chip_gen: v7x
topology: tpu7x:2x2x1
jax: 0.10.0
libtpu: 0.0.40
codegen_flags: <defaults>
</compile_context>

<pallas_src>
import functools

import jax
import jax.numpy as jnp
from jax.experimental import pallas as pl
from jax.experimental.pallas import tpu as pltpu


def _round_up(x, m):
    return ((x + m - 1) // m) * m


def _bf_terminator_kernel(h_ref, w_ref, b_ref, o_ref, acc_ref, *,
                          hidden_dim, pack, n_rows, inv_n):
    # h_ref:  (TILE_N, W) VMEM, W = pack * H (lane-dense packed rows)
    # w_ref:  (1, 2H) VMEM (grid-resident)
    # b_ref:  (1, 1) f32 SMEM
    # o_ref:  (1, 1) f32 VMEM
    # acc_ref:(8, W) f32 VMEM scratch -- deferred-reduce accumulator.
    i = pl.program_id(0)
    last = pl.num_programs(0) - 1
    tile_n, w_lanes = h_ref.shape  # static

    @pl.when(i == 0)
    def _init():
        acc_ref[...] = jnp.zeros_like(acc_ref)

    def _accumulate(x_f32):
        # Group rows into (tile_n//8, 8, W) and reduce the leading axis:
        # pure vreg-wise VPU adds, no per-step sublane (XLU) reduce.
        acc_ref[...] += jnp.sum(
            x_f32.reshape(tile_n // 8, 8, w_lanes), axis=0)

    @pl.when(i < last)
    def _body_full():
        _accumulate(h_ref[...].astype(jnp.float32))

    @pl.when(i == last)
    def _last_and_finalize():
        # Mask the ragged tail (and any block overhang past n_rows) to zero
        # before accumulating -- zero rows do not perturb the column sum.
        rem = n_rows - i * tile_n
        row_ids = jax.lax.broadcasted_iota(jnp.int32, (tile_n, w_lanes), 0)
        x = jnp.where(row_ids < rem, h_ref[...].astype(jnp.float32), 0.0)
        _accumulate(x)

        # Finalize: 8->1 sublane reduce, fold the two weight halves, lane dot,
        # scale by 1/N, bias, sigmoid (EUP).
        col_sum = jnp.sum(acc_ref[...], axis=0, keepdims=True)      # (1, W)
        w = w_ref[...].astype(jnp.float32)                          # (1, 2H)
        w_sum = w[:, :hidden_dim] + w[:, hidden_dim:]               # (1, H)
        if pack > 1:
            # Replicate across the `pack` lane groups; the lane reduce below
            # folds the groups, which is exactly the full column sum dot.
            w_sum = jnp.tile(w_sum, (1, pack))                      # (1, W)
        logit = (jnp.sum(col_sum * w_sum, axis=-1, keepdims=True) * inv_n
                 + b_ref[0, 0])
        o_ref[...] = jax.nn.sigmoid(logit)                          # (1, 1)


def _reference(h, weight, bias):
    """Pure-JAX reference mirroring the PyTorch forward exactly."""
    h = h.astype(jnp.float32)
    h_mean = jnp.mean(h, axis=0, keepdims=True)
    h_mean = jnp.broadcast_to(h_mean, h.shape)
    cat = jnp.concatenate([h, h_mean], axis=-1)
    out = cat @ weight.T + bias                        # (N, 1)
    out_mean = jnp.mean(out, axis=0, keepdims=True)    # (1, 1)
    return jax.nn.sigmoid(out_mean)


def bf_terminator(h, weight, bias, *, tile_n=4096, min_rows_for_pallas=0):
    """h: (N, H), weight: (1, 2H), bias: (1,) -> (1, 1) f32."""
    n, hdim = h.shape
    assert weight.shape == (1, 2 * hdim)

    # For tiny problems a kernel dispatch costs more than the work itself;
    # optionally fall back to pure JAX (disabled by default so the Pallas
    # path is always exercised here).
    if n < min_rows_for_pallas:
        return _reference(h, weight, bias)

    # Lane-dense packing: fold `pack` consecutive rows into the lane axis
    # (free metadata reshape for a contiguous row-major array) so a small H
    # fills the 128-wide lanes.
    pack = 1
    if hdim < 128 and 128 % hdim == 0 and n % (128 // hdim) == 0:
        pack = 128 // hdim
    n_rows = n // pack
    w_lanes = hdim * pack
    h_packed = h.reshape(n_rows, w_lanes)

    # Tile over (packed) rows. Keep the sublane dim a legal multiple for the
    # input dtype (8 for f32, 16 for bf16, 32 for 8-bit).
    mult = max(8, 32 // jnp.dtype(h.dtype).itemsize)
    tile_n = int(tile_n)
    tile_n = max(mult, min(tile_n, _round_up(n_rows, mult)))
    tile_n = _round_up(tile_n, mult)
    grid = pl.cdiv(n_rows, tile_n)

    b_smem = bias.reshape(1, 1).astype(jnp.float32)
    kernel = functools.partial(_bf_terminator_kernel, hidden_dim=hdim,
                               pack=pack, n_rows=n_rows, inv_n=1.0 / n)

    return pl.pallas_call(
        kernel,
        out_shape=jax.ShapeDtypeStruct((1, 1), jnp.float32),
        grid_spec=pltpu.PrefetchScalarGridSpec(
            num_scalar_prefetch=0,
            grid=(grid,),
            in_specs=[
                pl.BlockSpec((tile_n, w_lanes), lambda i: (i, 0)),    # h tile
                pl.BlockSpec((1, 2 * hdim), lambda i: (0, 0)),        # weight
                pl.BlockSpec(memory_space=pltpu.MemorySpace.SMEM),    # bias
            ],
            out_specs=pl.BlockSpec((1, 1), lambda i: (0, 0)),
            scratch_shapes=[pltpu.VMEM((8, w_lanes), jnp.float32)],
        ),
        compiler_params=pltpu.CompilerParams(
            # N is a reduction axis: output + accumulator live across it, so
            # it must stay sequential. (On v7x, splitting N over the two TCs
            # with per-core partials would be a further win for large N.)
            dimension_semantics=("arbitrary",),
        ),
    )(h_packed, weight, b_smem)


if __name__ == "__main__":
    key = jax.random.PRNGKey(0)
    k_h, k_w, k_b, k_h2, k_h3, k_h4 = jax.random.split(key, 6)

    N = 8          # batch of states
    HIDDEN = 32    # hidden_dim

    # nn.Linear(2H, 1): weight (1, 2H), bias (1,)
    h = jax.random.normal(k_h, (N, HIDDEN), dtype=jnp.float32)
    bound = 1.0 / jnp.sqrt(2.0 * HIDDEN)
    weight = jax.random.uniform(k_w, (1, 2 * HIDDEN), jnp.float32, -bound, bound)
    bias = jax.random.uniform(k_b, (1,), jnp.float32, -bound, bound)

    # 1) Small case (lane-packed, single masked tile).
    out = jax.block_until_ready(bf_terminator(h, weight, bias))
    ref = _reference(h, weight, bias)
    assert out.shape == (1, 1)
    assert jnp.allclose(out, ref, atol=1e-5, rtol=1e-5), (out, ref)

    # 2) Multi-tile, lane-packed, ragged last tile (no padding in HBM).
    N2 = 300
    h2 = jax.random.normal(k_h2, (N2, HIDDEN), dtype=jnp.float32)
    out2 = jax.block_until_ready(bf_terminator(h2, weight, bias, tile_n=32))
    ref2 = _reference(h2, weight, bias)
    assert jnp.allclose(out2, ref2, atol=1e-5, rtol=1e-5), (out2, ref2)

    # 3) Multi-tile, unpacked path (N not divisible by the pack factor).
    N3 = 301
    h3 = jax.random.normal(k_h3, (N3, HIDDEN), dtype=jnp.float32)
    out3 = jax.block_until_ready(bf_terminator(h3, weight, bias, tile_n=64))
    ref3 = _reference(h3, weight, bias)
    assert jnp.allclose(out3, ref3, atol=1e-5, rtol=1e-5), (out3, ref3)

    # 4) bf16 input (half the HBM traffic; f32 accumulation in-kernel).
    N4 = 256
    h4 = jax.random.normal(k_h4, (N4, HIDDEN), dtype=jnp.float32).astype(jnp.bfloat16)
    out4 = jax.block_until_ready(bf_terminator(h4, weight, bias, tile_n=48))
    ref4 = _reference(h4, weight, bias)
    assert jnp.allclose(out4, ref4, atol=1e-4, rtol=1e-4), (out4, ref4)

    print("KERNEL_OK")
</pallas_src>

<mosaic_0001>
module attributes {stable_mosaic.version = 11 : i64} {
  func.func @_bf_terminator_kernel(%arg0: i32, %arg1: memref<8x128xf32, #tpu.memory_space<vmem>>, %arg2: memref<1x64xf32, #tpu.memory_space<vmem>>, %arg3: memref<1x1xf32, #tpu.memory_space<smem>>, %arg4: memref<1x1xf32, #tpu.memory_space<vmem>>, %arg5: memref<8x128xf32, #tpu.memory_space<vmem>>) attributes {dimension_semantics = [#tpu.dimension_semantics<arbitrary>], iteration_bounds = array<i64: 1>, scalar_prefetch = 0 : i64, scratch_operands = 1 : i64, tpu.core_type = #tpu.core_type<tc>, window_params = [{transform_indices = @transform_0, window_bounds = array<i64: 8, 128>}, {pipeline_mode = #tpu.pipeline_mode<synchronous>, transform_indices = @transform_1, window_bounds = array<i64: 1, 64>}, {transform_indices = @transform_2, window_bounds = array<i64: 1, 1>}, {pipeline_mode = #tpu.pipeline_mode<synchronous>, transform_indices = @transform_3, window_bounds = array<i64: 1, 1>}]} {
    %c0_i32 = arith.constant 0 : i32
    %0 = arith.cmpi eq, %arg0, %c0_i32 : i32
    %1 = arith.extui %0 : i1 to i32
    %c0_i32_0 = arith.constant 0 : i32
    %2 = arith.cmpi ne, %1, %c0_i32_0 : i32
    scf.if %2 {
      %cst = arith.constant 0.000000e+00 : f32
      %9 = vector.broadcast %cst : f32 to vector<8x128xf32>
      %c0 = arith.constant 0 : index
      %c0_5 = arith.constant 0 : index
      %10 = vector.load %arg5[%c0, %c0_5] : memref<8x128xf32, #tpu.memory_space<vmem>>, vector<8x128xf32>
      tpu.vector_store %arg5[%c0, %c0_5], %9 {strides = array<i32>} : memref<8x128xf32, #tpu.memory_space<vmem>>, vector<8x128xf32>,
    } else {
    }
    %c0_i32_1 = arith.constant 0 : i32
    %3 = arith.cmpi slt, %arg0, %c0_i32_1 : i32
    %4 = arith.extui %3 : i1 to i32
    %c0_i32_2 = arith.constant 0 : i32
    %5 = arith.cmpi ne, %4, %c0_i32_2 : i32
    scf.if %5 {
      %c0 = arith.constant 0 : index
      %c0_5 = arith.constant 0 : index
      %9 = vector.load %arg1[%c0, %c0_5] : memref<8x128xf32, #tpu.memory_space<vmem>>, vector<8x128xf32>
      %c0_6 = arith.constant 0 : index
      %c0_7 = arith.constant 0 : index
      %10 = vector.load %arg5[%c0_6, %c0_7] : memref<8x128xf32, #tpu.memory_space<vmem>>, vector<8x128xf32>
      %11 = vector.shape_cast %9 : vector<8x128xf32> to vector<1x8x128xf32>
      %cst = arith.constant dense<0.000000e+00> : vector<8x128xf32>
      %12 = vector.multi_reduction <add>, %11, %cst [0] : vector<1x8x128xf32> to vector<8x128xf32>
      %13 = arith.addf %10, %12 : vector<8x128xf32>
      %c0_8 = arith.constant 0 : index
      %c0_9 = arith.constant 0 : index
      %14 = vector.load %arg5[%c0_8, %c0_9] : memref<8x128xf32, #tpu.memory_space<vmem>>, vector<8x128xf32>
      tpu.vector_store %arg5[%c0_8, %c0_9], %13 {strides = array<i32>} : memref<8x128xf32, #tpu.memory_space<vmem>>, vector<8x128xf32>,
    } else {
    }
    %c0_i32_3 = arith.constant 0 : i32
    %6 = arith.cmpi eq, %arg0, %c0_i32_3 : i32
    %7 = arith.extui %6 : i1 to i32
    %c0_i32_4 = arith.constant 0 : i32
    %8 = arith.cmpi ne, %7, %c0_i32_4 : i32
    scf.if %8 {
      %c8_i32 = arith.constant 8 : i32
      %9 = arith.muli %arg0, %c8_i32 : i32
      %c2_i32 = arith.constant 2 : i32
      %10 = arith.subi %c2_i32, %9 : i32
      %11 = tpu.iota {dimensions = array<i32: 0>} : vector<8x128xi32>
      %12 = vector.broadcast %10 : i32 to vector<8x128xi32>
      %13 = arith.cmpi slt, %11, %12 : vector<8x128xi32>
      %c0 = arith.constant 0 : index
      %c0_5 = arith.constant 0 : index
      %14 = vector.load %arg1[%c0, %c0_5] : memref<8x128xf32, #tpu.memory_space<vmem>>, vector<8x128xf32>
      %cst = arith.constant 0.000000e+00 : f32
      %15 = vector.broadcast %cst : f32 to vector<8x128xf32>
      %16 = arith.select %13, %14, %15 : vector<8x128xi1>, vector<8x128xf32>
      %c0_6 = arith.constant 0 : index
      %c0_7 = arith.constant 0 : index
      %17 = vector.load %arg5[%c0_6, %c0_7] : memref<8x128xf32, #tpu.memory_space<vmem>>, vector<8x128xf32>
      %18 = vector.shape_cast %16 : vector<8x128xf32> to vector<1x8x128xf32>
      %cst_8 = arith.constant dense<0.000000e+00> : vector<8x128xf32>
      %19 = vector.multi_reduction <add>, %18, %cst_8 [0] : vector<1x8x128xf32> to vector<8x128xf32>
      %20 = arith.addf %17, %19 : vector<8x128xf32>
      %c0_9 = arith.constant 0 : index
      %c0_10 = arith.constant 0 : index
      %21 = vector.load %arg5[%c0_9, %c0_10] : memref<8x128xf32, #tpu.memory_space<vmem>>, vector<8x128xf32>
      tpu.vector_store %arg5[%c0_9, %c0_10], %20 {strides = array<i32>} : memref<8x128xf32, #tpu.memory_space<vmem>>, vector<8x128xf32>,
      %c0_11 = arith.constant 0 : index
      %c0_12 = arith.constant 0 : index
      %22 = vector.load %arg5[%c0_11, %c0_12] : memref<8x128xf32, #tpu.memory_space<vmem>>, vector<8x128xf32>
      %cst_13 = arith.constant dense<0.000000e+00> : vector<128xf32>
      %23 = vector.multi_reduction <add>, %22, %cst_13 [0] : vector<8x128xf32> to vector<128xf32>
      %24 = vector.shape_cast %23 : vector<128xf32> to vector<1x128xf32>
      %c0_14 = arith.constant 0 : index
      %c0_15 = arith.constant 0 : index
      %25 = vector.load %arg2[%c0_14, %c0_15] : memref<1x64xf32, #tpu.memory_space<vmem>>, vector<1x64xf32>
      %26 = vector.extract_strided_slice %25 {offsets = [0, 0], sizes = [1, 32], strides = [1, 1]} : vector<1x64xf32> to vector<1x32xf32>
      %27 = vector.extract_strided_slice %25 {offsets = [0, 32], sizes = [1, 32], strides = [1, 1]} : vector<1x64xf32> to vector<1x32xf32>
      %28 = arith.addf %26, %27 : vector<1x32xf32>
      %29 = tpu.concatenate %28, %28, %28, %28 in 1 : vector<1x32xf32>, vector<1x32xf32>, vector<1x32xf32>, vector<1x32xf32> -> vector<1x128xf32>
      %30 = arith.mulf %24, %29 : vector<1x128xf32>
      %cst_16 = arith.constant dense<0.000000e+00> : vector<1xf32>
      %31 = vector.multi_reduction <add>, %30, %cst_16 [1] : vector<1x128xf32> to vector<1xf32>
      %32 = vector.shape_cast %31 : vector<1xf32> to vector<1x1xf32>
      %cst_17 = arith.constant 1.250000e-01 : f32
      %33 = vector.broadcast %cst_17 : f32 to vector<1x1xf32>
      %34 = arith.mulf %32, %33 : vector<1x1xf32>
      %c0_18 = arith.constant 0 : index
      %c0_19 = arith.constant 0 : index
      %35 = memref.load %arg3[%c0_18, %c0_19] : memref<1x1xf32, #tpu.memory_space<smem>>
      %36 = vector.broadcast %35 : f32 to vector<1x1xf32>
      %37 = arith.addf %34, %36 : vector<1x1xf32>
      %38 = arith.negf %37 : vector<1x1xf32>
      %39 = math.exp %38 : vector<1x1xf32>
      %cst_20 = arith.constant 1.000000e+00 : f32
      %40 = vector.broadcast %cst_20 : f32 to vector<1x1xf32>
      %41 = arith.addf %40, %39 : vector<1x1xf32>
      %42 = arith.divf %40, %41 : vector<1x1xf32>
      %c0_21 = arith.constant 0 : index
      %c0_22 = arith.constant 0 : index
      %43 = vector.load %arg4[%c0_21, %c0_22] : memref<1x1xf32, #tpu.memory_space<vmem>>, vector<1x1xf32>
      tpu.vector_store %arg4[%c0_21, %c0_22], %42 {strides = array<i32>} : memref<1x1xf32, #tpu.memory_space<vmem>>, vector<1x1xf32>,
    } else {
    }
    return
  }
  func.func @transform_0(%arg0: i32) -> (i32, i32) {
    %c0_i32 = arith.constant 0 : i32
    %c0_i32_0 = arith.constant 0 : i32
    return %arg0, %c0_i32 : i32, i32
  }
  func.func @transform_1(%arg0: i32) -> (i32, i32) {
    %c0_i32 = arith.constant 0 : i32
    %c0_i32_0 = arith.constant 0 : i32
    %c0_i32_1 = arith.constant 0 : i32
    return %c0_i32, %c0_i32_0 : i32, i32
  }
  func.func @transform_2(%arg0: i32) -> (i32, i32) {
    %c0_i32 = arith.constant 0 : i32
    %c0_i32_0 = arith.constant 0 : i32
    %c0_i32_1 = arith.constant 0 : i32
    return %c0_i32, %c0_i32_0 : i32, i32
  }
  func.func @transform_3(%arg0: i32) -> (i32, i32) {
    %c0_i32 = arith.constant 0 : i32
    %c0_i32_0 = arith.constant 0 : i32
    %c0_i32_1 = arith.constant 0 : i32
    return %c0_i32, %c0_i32_0 : i32, i32
  }
}

</mosaic_0001>

<bundles_post_ra>
// kernel: tpu_custom_call.1
= control target key start
LH: loop header
LB: loop body
LE: loop exit
PB: predicated region body
PF: predicated region fallthrough
CT: control target
= control target key end

     0   :  { %s188_s0 = inlined_call_operand.vmem [shape: f32[2,128], index: 0, kind: input, shape index: {}]   ;;  %s189_s1 = inlined_call_operand.vmem [shape: f32[1,64], index: 1, kind: input, shape index: {}]   ;;  %s190_s2 = inlined_call_operand.<no memory space> [shape: f32[1,1], index: 2, kind: input, shape index: {}]   ;;  %s191_s3 = inlined_call_operand.hbm [shape: f32[1,1], index: 3, kind: output, shape index: {}]  }
   0x1   :  { %v52_v0 = vld [vmem:[%s189_s1] sm:$0x1] }
   0x2   :  { %9 = vsyncpa [#allocation5], 0  ;;  %s143_s14 = smov 96   ;;  %v59_v1 = vlaneseq  ;;  %s144_s15 = smov 64   ;;  %v109_v7 = vld [vmem:[%s188_s0] sm:$0x3]  ;;  %v85_v22 = vstv %s190_s2 }
   0x3   :  { %54 = vrot.lane.b32.xlu0 %v52_v0, %s143_s14  ;;  %s145_s16 = smov 32   ;;  %v46_v8 = vrot.slane %v109_v7, 4  ;;  %vm72_vm0 = vcmask 261120   ;;  %vm74_vm1 = vcmask 523264   ;;  %vm76_vm2 = vcmask 785408   ;;  %s146_s19 = smov [#allocation4]  }
   0x4   :  { %v60_v2 = vshrl.u32 %v59_v1, 7  ;;  %vm79_vm3 = vcmask 1040384   ;;  %s101_s20 = sshll.u32 %s146_s19, 4  ;;  %vm93_vm4 = vcmask 0   ;;  %s102_s20 = int_to_ptr.vmem [resolvable:$true] %s101_s20 }
   0x5   :  { %v47_v9 = vadd.f32 %v109_v7, %v46_v8  ;;  %s119_s21 = scalar_lea.vmem %s102_s20, 16  ;;  %s123_s22 = scalar_lea.vmem %s102_s20, 32 }
   0x6   :  { %v61_v3 = vsub.s32 0, %v60_v2  ;;  %p120_p0 = scmp.ne.s32.totalorder %s102_s20, %s119_s21  ;;  %p124_p1 = scmp.lt.s32.totalorder %s102_s20, %s102_s20 }
   0x7   :  { %v48_v10 = vrot.slane %v47_v9, 2  ;;  %p125_p2 = scmp.lt.s32.totalorder %s123_s22, %s119_s21 }
   0x9   :  { %v49_v11 = vadd.f32 %v48_v10, %v47_v9  ;;  %p126_p3 = por %p125_p2, %p124_p1 }
   0xb   :  { %v50_v12 = vrot.slane %v49_v11, 1  ;;  %p127_p4 = pnand %p126_p3, %p120_p0 }
   0xd   :  { %v51_v16 = vadd.f32 %v50_v12, %v49_v11 }
  0x75   :  { %v55_v4 = vpop.permute.xlu0 %54 }
  0x76   :  { %v57_v5 = vadd.f32 %v55_v4, %v52_v0 }
  0x78   :  { %v62_v6 = vrot.slane %v57_v5, %v61_v3 }
  0x7a   :  { %66 = vrot.lane.b32.xlu1 %v62_v6, %s144_s15  ;;  %63 = vrot.lane.b32.xlu0 %v62_v6, %s145_s16 }
  0x7e   :  { %69 = vrot.lane.b32.xlu1 %v62_v6, %s143_s14 }
  0xec   :  { %v67_v13 = vpop.permute.xlu1 %66  ;;  %v64_v14 = vpop.permute.xlu0 %63 }
  0xed   :  { %v73_v15 = vsel %vm72_vm0, %v57_v5, %v64_v14 }
  0xee   :  { %v75_v18 = vsel %vm74_vm1, %v73_v15, %v67_v13 }
  0xf0   :  { %v70_v17 = vpop.permute.xlu1 %69 }
  0xf1   :  { %v77_v19 = vsel %vm76_vm2, %v75_v18, %v70_v17 }
  0xf2   :  { %v78_v20 = vmul.f32 %v77_v19, %v51_v16 }
  0xf4   :  { %v80_v21 = vsel %vm79_vm3, %v78_v20, 0.0 }
  0xf5   :  { %81 = vadd.xlane.f32.xlu0 %v80_v21 }
 0x182   :  { %v82_v23 = vpop.xlane.xlu0 %81 }
 0x183   :  { %v83_v24 = vmul.f32 0.125, %v82_v23 }
 0x185   :  { %v86_v25 = vadd.f32 %v85_v22, %v83_v24 }
 0x187   :  { %v110_v26 = vmul.f32 -1.442695, %v86_v25 }
 0x189   :  { %115 = vpow2.f32 %v110_v26 }
 0x193   :  { %v116_v27 = vpop.eup %115 }
 0x194   :  { %v90_v28 = vadd.f32 1.0, %v116_v27 }
 0x196   :  { %117 = vrcp.f32 %v90_v28 }
 0x1a0   :  { %v118_v29 = vpop.eup %117 }
 0x1a1   :  { %94 = vst.msk [vmem:[#allocation4] sm:$0x1] %vm93_vm4, %v118_v29 }
 0x1a2   :  { %130 = shalt.err (!%p127_p4)
}
 0x1a3   :  { %s131_s24 = scalar_lea.hbm %s191_s3, 16 }
 0x1a4   :  { %p132_p5 = scmp.ne.s32.totalorder %s191_s3, %s131_s24  ;;  %p135_p6 = scmp.lt.u32.totalorder %s131_s24, %s191_s3 }
 0x1a6   :  { %p137_p7 = pnand %p135_p6, %p132_p5 }
 0x1a8   :  { %140 = shalt.err (!%p137_p7)
}
 0x1a9   :  { %104 = dma.vmem_to_hbm [thread:$0]  %s102_s20, 16, %s191_s3, [#allocation5]  }
 0x1aa   :  { %141 = dma.done.wait [#allocation5], 16  }
 0x1ab   :  { %142 = vsyncadd [#allocation5], 4294967280 }
 0x1ac   :  { %108 = vsyncpa [#allocation5], 1 }

</bundles_post_ra>
